<compile_context>
chip_gen: v7x
topology: tpu7x:2x2x1
jax: 0.10.0
libtpu: 0.0.40
codegen_flags: <defaults>
</compile_context>

<pallas_src>
import functools

import jax
import jax.numpy as jnp
from jax.experimental import pallas as pl
from jax.experimental.pallas import tpu as pltpu


def _round_up(x, m):
    return ((x + m - 1) // m) * m


def _choose_tile_n(N, C, itemsize, sub, n_cols):
    """Pick the row-tile size from an explicit VMEM budget."""
    c_pad = _round_up(C, 128)
    # Per-row VMEM cost (bytes):
    #   logits block, double-buffered, lane-padded to 128 : 2 * c_pad * itemsize
    #   in-kernel f32 temporaries (x_f32, exp, iota, sel) : ~5 * c_pad * 4
    #   (tile_n, 1) columns tile-pad to (8, 128)          : n_cols * 2 * 512
    per_row = 2 * c_pad * itemsize + 5 * c_pad * 4 + n_cols * 2 * 512
    budget = 24 << 20  # fits v7x's 32 MiB scoped default with headroom
    tile_n = max(sub, budget // per_row)
    # Raw logits slab beyond ~8 MiB per step gives no extra amortization.
    tile_n = min(tile_n, max(sub, (8 << 20) // max(1, c_pad * itemsize)))
    if N >= 2 * sub:
        # Guarantee >= 2 grid steps so the "parallel" axis can shard across
        # v7x's 2 TensorCores (no effect on v5e/v6e).
        tile_n = min(tile_n, -(-N // 2))
    tile_n = min(tile_n, _round_up(N, sub))
    tile_n = max(sub, (tile_n // sub) * sub)
    return int(tile_n)


def _poly1_kernel(logits_ref, labels_ref, *rest, epsilon, has_weight):
    # logits_ref: (TN, C) native dtype; labels_ref: (TN, 1) int32;
    # optional wy_ref: (TN, 1) f32 per-sample class weight; out_ref: (TN, 1) f32.
    if has_weight:
        wy_ref, out_ref = rest
    else:
        (out_ref,) = rest

    xin = logits_ref[...]                                  # (TN, C) native dtype
    lab = labels_ref[...]                                  # (TN, 1) int32

    # One-hot(label) mask via a single iota compare (no cross-lane gather).
    iota = jax.lax.broadcasted_iota(jnp.int32, xin.shape, dimension=1)
    sel = iota == lab                                      # (TN, C) bool

    # Row max and label-logit selection in the native dtype (both exact:
    # max picks an existing value; the masked sum has one nonzero per row).
    m = jnp.max(xin, axis=-1, keepdims=True).astype(jnp.float32)        # (TN, 1)
    logit_y = jnp.sum(jnp.where(sel, xin, 0), axis=-1,
                      keepdims=True).astype(jnp.float32)                # (TN, 1)

    # Numerically-stable log-sum-exp in f32.
    x = xin.astype(jnp.float32)                            # (TN, C)
    s = jnp.sum(jnp.exp(x - m), axis=-1, keepdims=True)    # (TN, 1)
    lse = m + jnp.log(s)                                   # (TN, 1)

    # pt = softmax(x)[label] = exp(logit_y - lse)  (one EUP exp on a column).
    pt = jnp.exp(logit_y - lse)                            # (TN, 1)

    ce = lse - logit_y                                     # unweighted CE, 'none'
    if has_weight:
        ce = ce * wy_ref[...]
    out_ref[...] = (ce + epsilon * (1.0 - pt)).astype(out_ref.dtype)


def poly1_cross_entropy_loss(logits, labels, *, num_classes, epsilon=1.0,
                             reduction="none", weight=None, tile_n=None):
    """Pallas implementation of Poly1CrossEntropyLoss.forward."""
    N, C = logits.shape
    assert C == num_classes, "logits last dim must equal num_classes"

    itemsize = jnp.dtype(logits.dtype).itemsize
    # Sublane multiple for the logits block (8 for f32, 16 for bf16, ...).
    sub = 8 * max(1, 4 // itemsize)

    has_weight = weight is not None
    n_cols = 3 if has_weight else 2  # labels (+ w_y) + out narrow columns

    if tile_n is None:
        tile_n = _choose_tile_n(N, C, itemsize, sub, n_cols)
    else:
        tile_n = max(sub, _round_up(int(tile_n), sub))

    # Ragged grid: last block may overhang N.  Overhang rows compute row-local
    # garbage; their output rows are discarded by Pallas on writeback.
    grid = (pl.cdiv(N, tile_n),)

    labels2d = labels.astype(jnp.int32).reshape(N, 1)
    inputs = [logits, labels2d]
    in_specs = [
        pl.BlockSpec((tile_n, C), lambda i: (i, 0)),   # logits tile (native dtype)
        pl.BlockSpec((tile_n, 1), lambda i: (i, 0)),   # labels column
    ]
    if has_weight:
        # Gather the per-sample class weight on the XLA side (O(N) work), so
        # the kernel never touches the (C,) weight vector.
        w_y = weight.astype(jnp.float32)[labels].reshape(N, 1)
        inputs.append(w_y)
        in_specs.append(pl.BlockSpec((tile_n, 1), lambda i: (i, 0)))

    # VMEM footprint with lane/tile padding and in-kernel f32 temporaries.
    c_pad = _round_up(C, 128)
    footprint = (2 * tile_n * c_pad * itemsize       # logits, double-buffered
                 + 5 * tile_n * c_pad * 4            # f32 temporaries
                 + n_cols * 2 * tile_n * 512)        # (TN,1) columns tile-pad
    vmem_limit = int(min(max(footprint + (4 << 20), 16 << 20), 31 << 20))

    bytes_accessed = N * C * itemsize + n_cols * N * 4
    cost = pl.CostEstimate(flops=int(6 * N * C),
                           transcendentals=int(N * C),
                           bytes_accessed=int(bytes_accessed))

    out = pl.pallas_call(
        functools.partial(_poly1_kernel, epsilon=float(epsilon),
                          has_weight=has_weight),
        out_shape=jax.ShapeDtypeStruct((N, 1), jnp.float32),
        grid=grid,
        in_specs=in_specs,
        out_specs=pl.BlockSpec((tile_n, 1), lambda i: (i, 0)),
        compiler_params=pltpu.CompilerParams(
            dimension_semantics=("parallel",),
            vmem_limit_bytes=vmem_limit,
        ),
        cost_estimate=cost,
    )(*inputs)

    poly1 = out[:, 0].astype(logits.dtype)
    if reduction == "mean":
        poly1 = poly1.mean()
    elif reduction == "sum":
        poly1 = poly1.sum()
    return poly1


def _reference(logits, labels, num_classes, epsilon, weight=None):
    logits = logits.astype(jnp.float32)
    onehot = jax.nn.one_hot(labels, num_classes, dtype=jnp.float32)
    probs = jax.nn.softmax(logits, axis=-1)
    pt = jnp.sum(onehot * probs, axis=-1)
    log_probs = jax.nn.log_softmax(logits, axis=-1)
    ce = -jnp.sum(onehot * log_probs, axis=-1)
    if weight is not None:
        ce = ce * weight.astype(jnp.float32)[labels]
    return ce + epsilon * (1.0 - pt)


if __name__ == "__main__":
    key = jax.random.PRNGKey(0)
    k1, k2, k3, k4 = jax.random.split(key, 4)

    # Case 1: batch=8, num_classes=32, per-class weights, 'none' and 'mean'.
    N, C, eps = 8, 32, 1.0
    logits = jax.random.normal(k1, (N, C), dtype=jnp.float32)
    labels = jax.random.randint(k2, (N,), 0, C, dtype=jnp.int32)
    class_weight = jnp.linspace(0.5, 1.5, C, dtype=jnp.float32)

    out = jax.block_until_ready(poly1_cross_entropy_loss(
        logits, labels, num_classes=C, epsilon=eps,
        reduction="none", weight=class_weight))
    ref = _reference(logits, labels, C, eps, weight=class_weight)
    assert out.shape == (N,)
    assert jnp.allclose(out, ref, atol=1e-5, rtol=1e-5), (out, ref)

    out_mean = jax.block_until_ready(poly1_cross_entropy_loss(
        logits, labels, num_classes=C, epsilon=eps,
        reduction="mean", weight=class_weight))
    assert jnp.allclose(out_mean, ref.mean(), atol=1e-5, rtol=1e-5)

    # Case 2: unweighted, ragged N=13 with a forced small tile so the grid has
    # a partial last block (exercises the no-pad / discarded-overhang path).
    N2, C2 = 13, 32
    logits2 = jax.random.normal(k3, (N2, C2), dtype=jnp.float32)
    labels2 = jax.random.randint(k4, (N2,), 0, C2, dtype=jnp.int32)
    out2 = jax.block_until_ready(poly1_cross_entropy_loss(
        logits2, labels2, num_classes=C2, epsilon=eps,
        reduction="none", tile_n=8))
    ref2 = _reference(logits2, labels2, C2, eps)
    assert out2.shape == (N2,)
    assert jnp.allclose(out2, ref2, atol=1e-5, rtol=1e-5), (out2, ref2)

    out2_sum = jax.block_until_ready(poly1_cross_entropy_loss(
        logits2, labels2, num_classes=C2, epsilon=eps,
        reduction="sum", tile_n=8))
    assert jnp.allclose(out2_sum, ref2.sum(), atol=1e-4, rtol=1e-5)

    print("KERNEL_OK")
</pallas_src>

<mosaic_0001>
module attributes {stable_mosaic.version = 11 : i64} {
  func.func @_poly1_kernel(%arg0: i32, %arg1: memref<8x32xf32, #tpu.memory_space<vmem>>, %arg2: memref<8x1xi32, #tpu.memory_space<vmem>>, %arg3: memref<8x1xf32, #tpu.memory_space<vmem>>, %arg4: memref<8x1xf32, #tpu.memory_space<vmem>>) attributes {dimension_semantics = [#tpu.dimension_semantics<parallel>], iteration_bounds = array<i64: 1>, scalar_prefetch = 0 : i64, scratch_operands = 0 : i64, tpu.core_type = #tpu.core_type<tc>, window_params = [{transform_indices = @transform_0, window_bounds = array<i64: 8, 32>}, {transform_indices = @transform_1, window_bounds = array<i64: 8, 1>}, {transform_indices = @transform_2, window_bounds = array<i64: 8, 1>}, {transform_indices = @transform_3, window_bounds = array<i64: 8, 1>}]} {
    %c0 = arith.constant 0 : index
    %c0_0 = arith.constant 0 : index
    %0 = vector.load %arg1[%c0, %c0_0] : memref<8x32xf32, #tpu.memory_space<vmem>>, vector<8x32xf32>
    %c0_1 = arith.constant 0 : index
    %c0_2 = arith.constant 0 : index
    %1 = vector.load %arg2[%c0_1, %c0_2] : memref<8x1xi32, #tpu.memory_space<vmem>>, vector<8x1xi32>
    %2 = tpu.iota {dimensions = array<i32: 1>} : vector<8x32xi32>
    %3 = vector.broadcast %1 : vector<8x1xi32> to vector<8x32xi32>
    %4 = arith.cmpi eq, %2, %3 : vector<8x32xi32>
    %cst = arith.constant dense<0xFF800000> : vector<8xf32>
    %5 = vector.multi_reduction <maximumf>, %0, %cst [1] : vector<8x32xf32> to vector<8xf32>
    %6 = vector.shape_cast %5 : vector<8xf32> to vector<8x1xf32>
    %c0_i32 = arith.constant 0 : i32
    %7 = arith.sitofp %c0_i32 : i32 to f32
    %8 = vector.broadcast %7 : f32 to vector<8x32xf32>
    %9 = arith.select %4, %0, %8 : vector<8x32xi1>, vector<8x32xf32>
    %cst_3 = arith.constant dense<0.000000e+00> : vector<8xf32>
    %10 = vector.multi_reduction <add>, %9, %cst_3 [1] : vector<8x32xf32> to vector<8xf32>
    %11 = vector.shape_cast %10 : vector<8xf32> to vector<8x1xf32>
    %12 = vector.broadcast %6 : vector<8x1xf32> to vector<8x32xf32>
    %13 = arith.subf %0, %12 : vector<8x32xf32>
    %14 = math.exp %13 : vector<8x32xf32>
    %cst_4 = arith.constant dense<0.000000e+00> : vector<8xf32>
    %15 = vector.multi_reduction <add>, %14, %cst_4 [1] : vector<8x32xf32> to vector<8xf32>
    %16 = vector.shape_cast %15 : vector<8xf32> to vector<8x1xf32>
    %17 = math.log %16 : vector<8x1xf32>
    %18 = arith.addf %6, %17 : vector<8x1xf32>
    %19 = arith.subf %11, %18 : vector<8x1xf32>
    %20 = math.exp %19 : vector<8x1xf32>
    %21 = arith.subf %18, %11 : vector<8x1xf32>
    %c0_5 = arith.constant 0 : index
    %c0_6 = arith.constant 0 : index
    %22 = vector.load %arg3[%c0_5, %c0_6] : memref<8x1xf32, #tpu.memory_space<vmem>>, vector<8x1xf32>
    %23 = arith.mulf %21, %22 : vector<8x1xf32>
    %cst_7 = arith.constant 1.000000e+00 : f32
    %24 = vector.broadcast %cst_7 : f32 to vector<8x1xf32>
    %25 = arith.subf %24, %20 : vector<8x1xf32>
    %cst_8 = arith.constant 1.000000e+00 : f32
    %26 = vector.broadcast %cst_8 : f32 to vector<8x1xf32>
    %27 = arith.mulf %26, %25 : vector<8x1xf32>
    %28 = arith.addf %23, %27 : vector<8x1xf32>
    %c0_9 = arith.constant 0 : index
    %c0_10 = arith.constant 0 : index
    %29 = vector.load %arg4[%c0_9, %c0_10] : memref<8x1xf32, #tpu.memory_space<vmem>>, vector<8x1xf32>
    tpu.vector_store %arg4[%c0_9, %c0_10], %28 {strides = array<i32>} : memref<8x1xf32, #tpu.memory_space<vmem>>, vector<8x1xf32>,
    return
  }
  func.func @transform_0(%arg0: i32) -> (i32, i32) {
    %c0_i32 = arith.constant 0 : i32
    %c0_i32_0 = arith.constant 0 : i32
    return %arg0, %c0_i32 : i32, i32
  }
  func.func @transform_1(%arg0: i32) -> (i32, i32) {
    %c0_i32 = arith.constant 0 : i32
    %c0_i32_0 = arith.constant 0 : i32
    return %arg0, %c0_i32 : i32, i32
  }
  func.func @transform_2(%arg0: i32) -> (i32, i32) {
    %c0_i32 = arith.constant 0 : i32
    %c0_i32_0 = arith.constant 0 : i32
    return %arg0, %c0_i32 : i32, i32
  }
  func.func @transform_3(%arg0: i32) -> (i32, i32) {
    %c0_i32 = arith.constant 0 : i32
    %c0_i32_0 = arith.constant 0 : i32
    return %arg0, %c0_i32 : i32, i32
  }
}

</mosaic_0001>

<bundles_post_ra>
// kernel: tpu_custom_call.1
= control target key start
LH: loop header
LB: loop body
LE: loop exit
PB: predicated region body
PF: predicated region fallthrough
CT: control target
= control target key end

     0   :  { %vm22_vm0 = vcmask 261120   ;;  %v61_v1 = vmov 0   ;;  %v16_v7 = vlaneseq  ;;  %vm47_vm2 = vcmask 7168   ;;  %s97_s0 = inlined_call_operand.vmem [shape: f32[8,32], index: 0, kind: input, shape index: {}]   ;;  %s98_s1 = inlined_call_operand.vmem [shape: s32[8,1], index: 1, kind: input, shape index: {}]   ;;  %s99_s2 = inlined_call_operand.vmem [shape: f32[8,1], index: 2, kind: input, shape index: {}]   ;;  %s100_s3 = inlined_call_operand.vmem [shape: f32[8,1], index: 3, kind: output, shape index: {}]  }
   0x1   :  { %v14_v0 = vld [vmem:[%s97_s0] sm:$0xff]  ;;  %54 = vset.pattern.permute.xlu0 %v61_v1 }
   0x2   :  { %v23_v2 = vsel %vm22_vm0, %v14_v0, -inf  ;;  %v15_v3 = vld [vmem:[%s98_s1] sm:$0xff]  ;;  %v17_v8 = vand.u32 127, %v16_v7 }
   0x3   :  { %24 = vmax.xlane.f32.xlu0 %v23_v2  ;;  %v43_v22 = vld [vmem:[%s99_s2] sm:$0xff] }
  0x19   :  { %19 = vperm.xlu0 %54, %v15_v3  }
  0x90   :  { %v25_v4 = vpop.xlane.xlu0 %24 }
  0x91   :  { %v30_v5 = vsub.f32 %v14_v0, %v25_v4 }
  0x93   :  { %v31_v6 = vmul.f32 1.442695, %v30_v5 }
  0x95   :  { %55 = vpow2.f32 %v31_v6 }
  0x98   :  { %v20_v9 = vpop.permute.xlu0 %19 }
  0x99   :  { %vm21_vm1 = vcmp.eq.s32.totalorder %v17_v8, %v20_v9 }
  0x9a   :  { %v26_v11 = vsel %vm21_vm1, %v14_v0, 0.0 }
  0x9b   :  { %v27_v13 = vsel %vm22_vm0, %v26_v11, 0.0 }
  0x9f   :  { %v56_v10 = vpop.eup %55 }
  0xa0   :  { %v33_v12 = vsel %vm22_vm0, %v56_v10, 0.0 }
  0xa1   :  { %34 = vadd.xlane.f32.xlu1 %v33_v12 }
  0xa5   :  { %28 = vadd.xlane.f32.xlu1 %v27_v13 }
 0x12e   :  { %v35_v14 = vpop.xlane.xlu1 %34 }
 0x12f   :  { %57 = vlog2.f32 %v35_v14 }
 0x132   :  { %v29_v17 = vpop.xlane.xlu1 %28 }
 0x139   :  { %v58_v15 = vpop.eup %57 }
 0x13a   :  { %v37_v16 = vmul.f32 0.6931472, %v58_v15 }
 0x13c   :  { %v38_v18 = vadd.f32 %v37_v16, %v25_v4 }
 0x13e   :  { %v39_v19 = vsub.f32 %v29_v17, %v38_v18  ;;  %v42_v21 = vsub.f32 %v38_v18, %v29_v17 }
 0x140   :  { %v40_v20 = vmul.f32 1.442695, %v39_v19  ;;  %v44_v24 = vmul.f32 %v43_v22, %v42_v21 }
 0x142   :  { %59 = vpow2.f32 %v40_v20 }
 0x14c   :  { %v60_v23 = vpop.eup %59 }
 0x14d   :  { %v45_v25 = vsub.f32 1.0, %v60_v23 }
 0x14f   :  { %v46_v26 = vadd.f32 %v45_v25, %v44_v24 }
 0x151   :  { %48 = vst.msk [vmem:[%s100_s3] sm:$0xff] %vm47_vm2, %v46_v26 }

</bundles_post_ra>
